<compile_context>
chip_gen: v7x
topology: tpu7x:2x2x1
jax: 0.10.0
libtpu: 0.0.40
codegen_flags: <defaults>
</compile_context>

<pallas_src>
import functools

import jax
import jax.numpy as jnp
import numpy as np
from jax.experimental import pallas as pl
from jax.experimental.pallas import tpu as pltpu


# ----------------------------------------------------------------------------
# Pallas kernel: one batch-chunk (Bt elements) per grid step, all in VMEM.
# ----------------------------------------------------------------------------
def feature_adaptation_kernel(x_ref, w1t_ref, b1_ref, w2_ref, b2_ref,
                              wc_ref, bc_ref, mask_ref, o_ref, *, W):
    Bt, C, HW = x_ref.shape
    N = Bt * HW

    # ---- channel-attention gate (f32, VPU/XLU) + per-channel scaling -------
    pieces = []
    for b in range(Bt):                                   # static unroll
        xb = x_ref[b]                                                  # (C, HW)
        pooled = jnp.mean(xb, axis=1, keepdims=True)                   # (C, 1)
        z1 = jnp.sum(w1t_ref[...] * pooled, axis=0, keepdims=True)     # (1, C)
        z1 = jnp.maximum(z1 + b1_ref[...], 0.0)
        z2 = jnp.sum(w2_ref[...] * z1, axis=1, keepdims=True) + b2_ref[...]
        importance = jax.nn.sigmoid(z2)                                # (C, 1)
        pieces.append(xb * importance)                                 # (C, HW)

    # Fold the batch onto the lane axis -> one fat matmul with N = Bt*HW.
    base = pieces[0] if Bt == 1 else jnp.concatenate(pieces, axis=1)   # (C, N)

    # ---- 9 shifted copies (3x3 neighbourhood) via XLU rolls + masks --------
    taps = []
    k = 0
    for dy in (-1, 0, 1):
        for dx in (-1, 0, 1):
            off = dy * W + dx
            if off == 0:
                taps.append(base)                        # centre tap (mask==1)
            else:
                # shifted[p] = base[(p + off) mod N]; wrapped / out-of-image
                # positions are exactly the masked border positions.
                shifted = pltpu.roll(base, (-off) % N, axis=1)
                taps.append(shifted * mask_ref[k])       # mask_ref[k]: (1, N)
            k += 1
    stacked = jnp.concatenate(taps, axis=0).astype(jnp.bfloat16)       # (9C, N)

    # ---- fused grouped-3x3 + residual + 1x1 adapter: one bf16 MXU matmul ---
    out = jnp.dot(wc_ref[...], stacked,
                  preferred_element_type=jnp.float32) + bc_ref[...]    # (Cout, N)

    for b in range(Bt):                                  # lane-aligned slices
        o_ref[b] = out[:, b * HW:(b + 1) * HW].astype(o_ref.dtype)


# ----------------------------------------------------------------------------
# Wrapper-side weight folding / mask precomputation.
# ----------------------------------------------------------------------------
def build_fused_weights(w_sp, b_sp, w_ad, groups):
    """Fold grouped 3x3 conv weights, residual identity and the 1x1 adapter
    into a single (Cout, 9*C) matrix (bf16), plus the folded bias (Cout, 1)."""
    C, ipg = w_sp.shape[0], w_sp.shape[1]
    opg = C // groups
    Cout = w_ad.shape[0]
    wa = w_ad.reshape(Cout, C).astype(jnp.float32)

    o_idx = jnp.arange(C)
    i_idx = jnp.arange(C)
    same_group = (o_idx[:, None] // opg) == (i_idx[None, :] // ipg)   # (Co, Ci)
    il = i_idx[None, :] % ipg                                         # local in-ch
    w_k = w_sp.reshape(C, ipg, 9)                                     # (Co, ipg, 9)
    gathered = w_k[o_idx[:, None], il, :]                             # (Co, Ci, 9)
    dense = jnp.where(same_group[:, :, None], gathered, 0.0)          # (Co, Ci, 9)
    # residual (x + conv(x)) folded into the centre tap
    dense = dense.at[:, :, 4].add(jnp.eye(C, dtype=dense.dtype))
    m = jnp.transpose(dense, (2, 0, 1))                               # (9, Co, Ci)
    wm = jnp.einsum("oc,kci->koi", wa, m)                             # (9, Cout, Ci)
    w_comb = jnp.transpose(wm, (1, 0, 2)).reshape(Cout, 9 * C)        # (Cout, 9C)
    b_comb = (wa @ b_sp.reshape(C, 1)).astype(jnp.float32)            # (Cout, 1)
    return w_comb.astype(jnp.bfloat16), b_comb


def build_border_masks(H, W, Bt):
    """(9, 1, Bt*H*W) float32 border masks, per-image pattern tiled Bt times."""
    hh, ww = np.meshgrid(np.arange(H), np.arange(W), indexing="ij")
    hh = hh.reshape(-1)
    ww = ww.reshape(-1)
    rows = []
    for dy in (-1, 0, 1):
        for dx in (-1, 0, 1):
            valid = ((hh + dy >= 0) & (hh + dy < H) &
                     (ww + dx >= 0) & (ww + dx < W))
            rows.append(valid.astype(np.float32))
    mask = np.tile(np.stack(rows, axis=0), (1, Bt))                   # (9, Bt*HW)
    return jnp.asarray(mask.reshape(9, 1, Bt * H * W))


def _num_tensorcores_per_chip():
    """2 physical TensorCores per chip on v4 / v5p / v7x, else 1 (v5e, v6e)."""
    try:
        kind = jax.devices()[0].device_kind.lower()
    except Exception:
        return 1
    if "v7" in kind or "v4" in kind or "v5p" in kind:
        return 2
    return 1


# ----------------------------------------------------------------------------
# Wrapper: parameter reshaping + pallas_call plumbing.
# ----------------------------------------------------------------------------
def feature_adaptation(x_nchw, params, groups):
    B, C, H, W = x_nchw.shape
    Cout = params["w_ad"].shape[0]
    HW = H * W

    # One grid step per TensorCore: the whole batch folds into the matmul N on
    # single-TC chips; two batch halves run in parallel on dual-TC chips.
    # TODO(synk): when B == 1 on a dual-TC chip, split the HW lane axis into
    # two 128-lane halves instead so both cores still get work.
    num_tc = _num_tensorcores_per_chip()
    num_steps = num_tc if (B >= num_tc and B % num_tc == 0) else 1
    Bt = B // num_steps

    x = x_nchw.reshape(B, C, HW).astype(jnp.float32)      # flat NCHW, HW on lanes

    w1t = params["w1"].reshape(C, C).T.astype(jnp.float32)            # (Ci, Co)
    b1 = params["b1"].reshape(1, C).astype(jnp.float32)
    w2 = params["w2"].reshape(C, C).astype(jnp.float32)               # (Co, Ci)
    b2 = params["b2"].reshape(C, 1).astype(jnp.float32)
    w_comb, b_comb = build_fused_weights(params["w_sp"], params["b_sp"],
                                         params["w_ad"], groups)
    mask = build_border_masks(H, W, Bt)

    # VMEM budget guard: per-step working set (f32 taps + bf16 stacked +
    # double-buffered x/out blocks + weights/masks) must stay well under the
    # 32 MiB default scoped limit (v7x has only 64 MiB physical per core).
    per_step_bytes = (4 * (2 * Bt * C * HW + 2 * Bt * Cout * HW
                           + 10 * C * Bt * HW + 9 * Bt * HW + Cout * Bt * HW)
                      + 2 * (Cout * 9 * C + 9 * C * Bt * HW))
    assert per_step_bytes < 16 * 1024 * 1024, (
        "per-step VMEM footprint too large for this block size; tile the HW "
        "(lane) axis into 128-lane multiples for production shapes")

    kernel = functools.partial(feature_adaptation_kernel, W=W)

    grid_spec = pltpu.PrefetchScalarGridSpec(
        num_scalar_prefetch=0,
        grid=(num_steps,),
        in_specs=[
            pl.BlockSpec((Bt, C, HW), lambda s: (s, 0, 0)),
            pl.BlockSpec((C, C), lambda s: (0, 0)),
            pl.BlockSpec((1, C), lambda s: (0, 0)),
            pl.BlockSpec((C, C), lambda s: (0, 0)),
            pl.BlockSpec((C, 1), lambda s: (0, 0)),
            pl.BlockSpec((Cout, 9 * C), lambda s: (0, 0)),
            pl.BlockSpec((Cout, 1), lambda s: (0, 0)),
            pl.BlockSpec((9, 1, Bt * HW), lambda s: (0, 0, 0)),
        ],
        out_specs=pl.BlockSpec((Bt, Cout, HW), lambda s: (s, 0, 0)),
    )

    cost = pl.CostEstimate(
        flops=int(B * (2 * Cout * 9 * C * HW + 4 * C * C + 12 * C * HW)),
        transcendentals=int(B * C),
        bytes_accessed=int(4 * (B * C * HW + B * Cout * HW + 2 * C * C + 3 * C
                                + 9 * Bt * HW + Cout)
                           + 2 * Cout * 9 * C),
    )

    out = pl.pallas_call(
        kernel,
        out_shape=jax.ShapeDtypeStruct((B, Cout, HW), jnp.float32),
        grid_spec=grid_spec,
        compiler_params=pltpu.CompilerParams(
            dimension_semantics=("parallel",)),
        cost_estimate=cost,
    )(x, w1t, b1, w2, b2, w_comb, b_comb, mask)

    return out.reshape(B, Cout, H, W)                     # still NCHW


# ----------------------------------------------------------------------------
# Pure-JAX reference (NCHW, mirrors the PyTorch forward exactly, all f32).
# ----------------------------------------------------------------------------
def reference(x, p, groups):
    B, C, H, W = x.shape
    pooled = jnp.mean(x, axis=(2, 3))                                 # (B, C)
    z1 = jax.nn.relu(pooled @ p["w1"].reshape(C, C).T + p["b1"])
    z2 = jax.nn.sigmoid(z1 @ p["w2"].reshape(C, C).T + p["b2"])
    gated = x * z2[:, :, None, None]
    sp = jax.lax.conv_general_dilated(
        gated, p["w_sp"], (1, 1), "SAME",
        feature_group_count=groups,
        dimension_numbers=("NCHW", "OIHW", "NCHW")) + p["b_sp"][None, :, None, None]
    gated2 = sp + gated
    out = jax.lax.conv_general_dilated(
        gated2, p["w_ad"], (1, 1), "SAME",
        dimension_numbers=("NCHW", "OIHW", "NCHW"))
    return out


# ----------------------------------------------------------------------------
def make_params(key, in_channels, out_channels, groups):
    C, Cout = in_channels, out_channels
    ipg = C // groups
    k1, k2, k3, k4, k5 = jax.random.split(key, 5)
    # gate 1x1 convs: xavier_normal gain=0.1, bias=0
    std_g = 0.1 * np.sqrt(2.0 / (C + C))
    w1 = std_g * jax.random.normal(k1, (C, C, 1, 1), jnp.float32)
    w2 = std_g * jax.random.normal(k2, (C, C, 1, 1), jnp.float32)
    b1 = jnp.zeros((C,), jnp.float32)
    b2 = jnp.zeros((C,), jnp.float32)
    # grouped spatial conv: xavier_normal gain=0.1, bias default (small uniform)
    std_s = 0.1 * np.sqrt(2.0 / (ipg * 9 + ipg * 9))
    w_sp = std_s * jax.random.normal(k3, (C, ipg, 3, 3), jnp.float32)
    bound = 1.0 / np.sqrt(ipg * 9)
    b_sp = jax.random.uniform(k4, (C,), jnp.float32, -bound, bound)
    # adapter: kaiming_normal, no bias
    std_a = np.sqrt(2.0 / C)
    w_ad = std_a * jax.random.normal(k5, (Cout, C, 1, 1), jnp.float32)
    return {"w1": w1, "b1": b1, "w2": w2, "b2": b2,
            "w_sp": w_sp, "b_sp": b_sp, "w_ad": w_ad}


if __name__ == "__main__":
    B, C, H, W = 2, 8, 16, 16
    Cout = 16
    layer_idx = None                      # not in [8,11,14,17,20] -> groups = C // 4
    groups = C if layer_idx in [8, 11, 14, 17, 20] else C // 4

    key = jax.random.PRNGKey(0)
    kx, kp = jax.random.split(key)
    x = jax.random.normal(kx, (B, C, H, W), jnp.float32)
    params = make_params(kp, C, Cout, groups)

    run = jax.jit(functools.partial(feature_adaptation, groups=groups))
    out = jax.block_until_ready(run(x, params))

    ref = jax.block_until_ready(reference(x, params, groups))
    # bf16 MXU operands with f32 accumulation -> bf16-level comparison tolerance.
    np.testing.assert_allclose(np.asarray(out), np.asarray(ref),
                               rtol=2e-2, atol=2e-2)
    print("KERNEL_OK")
</pallas_src>

<mosaic_0001>
module attributes {stable_mosaic.version = 11 : i64} {
  func.func @feature_adaptation_kernel(%arg0: i32, %arg1: memref<2x8x256xf32, #tpu.memory_space<vmem>>, %arg2: memref<8x8xf32, #tpu.memory_space<vmem>>, %arg3: memref<1x8xf32, #tpu.memory_space<vmem>>, %arg4: memref<8x8xf32, #tpu.memory_space<vmem>>, %arg5: memref<8x1xf32, #tpu.memory_space<vmem>>, %arg6: memref<16x72xbf16, #tpu.memory_space<vmem>>, %arg7: memref<16x1xf32, #tpu.memory_space<vmem>>, %arg8: memref<9x1x512xf32, #tpu.memory_space<vmem>>, %arg9: memref<2x16x256xf32, #tpu.memory_space<vmem>>) attributes {dimension_semantics = [#tpu.dimension_semantics<parallel>], iteration_bounds = array<i64: 1>, scalar_prefetch = 0 : i64, scratch_operands = 0 : i64, tpu.core_type = #tpu.core_type<tc>, window_params = [{transform_indices = @transform_0, window_bounds = array<i64: 2, 8, 256>}, {pipeline_mode = #tpu.pipeline_mode<synchronous>, transform_indices = @transform_1, window_bounds = array<i64: 8, 8>}, {pipeline_mode = #tpu.pipeline_mode<synchronous>, transform_indices = @transform_2, window_bounds = array<i64: 1, 8>}, {pipeline_mode = #tpu.pipeline_mode<synchronous>, transform_indices = @transform_3, window_bounds = array<i64: 8, 8>}, {pipeline_mode = #tpu.pipeline_mode<synchronous>, transform_indices = @transform_4, window_bounds = array<i64: 8, 1>}, {pipeline_mode = #tpu.pipeline_mode<synchronous>, transform_indices = @transform_5, window_bounds = array<i64: 16, 72>}, {pipeline_mode = #tpu.pipeline_mode<synchronous>, transform_indices = @transform_6, window_bounds = array<i64: 16, 1>}, {pipeline_mode = #tpu.pipeline_mode<synchronous>, transform_indices = @transform_7, window_bounds = array<i64: 9, 1, 512>}, {transform_indices = @transform_8, window_bounds = array<i64: 2, 16, 256>}]} {
    %c0 = arith.constant 0 : index
    %c0_0 = arith.constant 0 : index
    %c0_1 = arith.constant 0 : index
    %0 = vector.load %arg1[%c0, %c0_0, %c0_1] : memref<2x8x256xf32, #tpu.memory_space<vmem>>, vector<1x8x256xf32>
    %1 = vector.shape_cast %0 : vector<1x8x256xf32> to vector<8x256xf32>
    %cst = arith.constant dense<0.000000e+00> : vector<8xf32>
    %2 = vector.multi_reduction <add>, %1, %cst [1] : vector<8x256xf32> to vector<8xf32>
    %3 = vector.shape_cast %2 : vector<8xf32> to vector<8x1xf32>
    %cst_2 = arith.constant 2.560000e+02 : f32
    %4 = vector.broadcast %cst_2 : f32 to vector<8x1xf32>
    %5 = arith.divf %3, %4 : vector<8x1xf32>
    %c0_3 = arith.constant 0 : index
    %c0_4 = arith.constant 0 : index
    %6 = vector.load %arg2[%c0_3, %c0_4] : memref<8x8xf32, #tpu.memory_space<vmem>>, vector<8x8xf32>
    %7 = vector.broadcast %5 : vector<8x1xf32> to vector<8x8xf32>
    %8 = arith.mulf %6, %7 : vector<8x8xf32>
    %cst_5 = arith.constant dense<0.000000e+00> : vector<8xf32>
    %9 = vector.multi_reduction <add>, %8, %cst_5 [0] : vector<8x8xf32> to vector<8xf32>
    %10 = vector.shape_cast %9 : vector<8xf32> to vector<1x8xf32>
    %c0_6 = arith.constant 0 : index
    %c0_7 = arith.constant 0 : index
    %11 = vector.load %arg3[%c0_6, %c0_7] : memref<1x8xf32, #tpu.memory_space<vmem>>, vector<1x8xf32>
    %12 = arith.addf %10, %11 : vector<1x8xf32>
    %cst_8 = arith.constant 0.000000e+00 : f32
    %13 = vector.broadcast %cst_8 : f32 to vector<1x8xf32>
    %14 = arith.maximumf %12, %13 : vector<1x8xf32>
    %c0_9 = arith.constant 0 : index
    %c0_10 = arith.constant 0 : index
    %15 = vector.load %arg4[%c0_9, %c0_10] : memref<8x8xf32, #tpu.memory_space<vmem>>, vector<8x8xf32>
    %16 = vector.broadcast %14 : vector<1x8xf32> to vector<8x8xf32>
    %17 = arith.mulf %15, %16 : vector<8x8xf32>
    %cst_11 = arith.constant dense<0.000000e+00> : vector<8xf32>
    %18 = vector.multi_reduction <add>, %17, %cst_11 [1] : vector<8x8xf32> to vector<8xf32>
    %19 = vector.shape_cast %18 : vector<8xf32> to vector<8x1xf32>
    %c0_12 = arith.constant 0 : index
    %c0_13 = arith.constant 0 : index
    %20 = vector.load %arg5[%c0_12, %c0_13] : memref<8x1xf32, #tpu.memory_space<vmem>>, vector<8x1xf32>
    %21 = arith.addf %19, %20 : vector<8x1xf32>
    %22 = arith.negf %21 : vector<8x1xf32>
    %23 = math.exp %22 : vector<8x1xf32>
    %cst_14 = arith.constant 1.000000e+00 : f32
    %24 = vector.broadcast %cst_14 : f32 to vector<8x1xf32>
    %25 = arith.addf %24, %23 : vector<8x1xf32>
    %26 = arith.divf %24, %25 : vector<8x1xf32>
    %27 = vector.broadcast %26 : vector<8x1xf32> to vector<8x256xf32>
    %28 = arith.mulf %1, %27 : vector<8x256xf32>
    %c1 = arith.constant 1 : index
    %c0_15 = arith.constant 0 : index
    %c0_16 = arith.constant 0 : index
    %29 = vector.load %arg1[%c1, %c0_15, %c0_16] : memref<2x8x256xf32, #tpu.memory_space<vmem>>, vector<1x8x256xf32>
    %30 = vector.shape_cast %29 : vector<1x8x256xf32> to vector<8x256xf32>
    %cst_17 = arith.constant dense<0.000000e+00> : vector<8xf32>
    %31 = vector.multi_reduction <add>, %30, %cst_17 [1] : vector<8x256xf32> to vector<8xf32>
    %32 = vector.shape_cast %31 : vector<8xf32> to vector<8x1xf32>
    %cst_18 = arith.constant 2.560000e+02 : f32
    %33 = vector.broadcast %cst_18 : f32 to vector<8x1xf32>
    %34 = arith.divf %32, %33 : vector<8x1xf32>
    %c0_19 = arith.constant 0 : index
    %c0_20 = arith.constant 0 : index
    %35 = vector.load %arg2[%c0_19, %c0_20] : memref<8x8xf32, #tpu.memory_space<vmem>>, vector<8x8xf32>
    %36 = vector.broadcast %34 : vector<8x1xf32> to vector<8x8xf32>
    %37 = arith.mulf %35, %36 : vector<8x8xf32>
    %cst_21 = arith.constant dense<0.000000e+00> : vector<8xf32>
    %38 = vector.multi_reduction <add>, %37, %cst_21 [0] : vector<8x8xf32> to vector<8xf32>
    %39 = vector.shape_cast %38 : vector<8xf32> to vector<1x8xf32>
    %c0_22 = arith.constant 0 : index
    %c0_23 = arith.constant 0 : index
    %40 = vector.load %arg3[%c0_22, %c0_23] : memref<1x8xf32, #tpu.memory_space<vmem>>, vector<1x8xf32>
    %41 = arith.addf %39, %40 : vector<1x8xf32>
    %cst_24 = arith.constant 0.000000e+00 : f32
    %42 = vector.broadcast %cst_24 : f32 to vector<1x8xf32>
    %43 = arith.maximumf %41, %42 : vector<1x8xf32>
    %c0_25 = arith.constant 0 : index
    %c0_26 = arith.constant 0 : index
    %44 = vector.load %arg4[%c0_25, %c0_26] : memref<8x8xf32, #tpu.memory_space<vmem>>, vector<8x8xf32>
    %45 = vector.broadcast %43 : vector<1x8xf32> to vector<8x8xf32>
    %46 = arith.mulf %44, %45 : vector<8x8xf32>
    %cst_27 = arith.constant dense<0.000000e+00> : vector<8xf32>
    %47 = vector.multi_reduction <add>, %46, %cst_27 [1] : vector<8x8xf32> to vector<8xf32>
    %48 = vector.shape_cast %47 : vector<8xf32> to vector<8x1xf32>
    %c0_28 = arith.constant 0 : index
    %c0_29 = arith.constant 0 : index
    %49 = vector.load %arg5[%c0_28, %c0_29] : memref<8x1xf32, #tpu.memory_space<vmem>>, vector<8x1xf32>
    %50 = arith.addf %48, %49 : vector<8x1xf32>
    %51 = arith.negf %50 : vector<8x1xf32>
    %52 = math.exp %51 : vector<8x1xf32>
    %cst_30 = arith.constant 1.000000e+00 : f32
    %53 = vector.broadcast %cst_30 : f32 to vector<8x1xf32>
    %54 = arith.addf %53, %52 : vector<8x1xf32>
    %55 = arith.divf %53, %54 : vector<8x1xf32>
    %56 = vector.broadcast %55 : vector<8x1xf32> to vector<8x256xf32>
    %57 = arith.mulf %30, %56 : vector<8x256xf32>
    %58 = tpu.concatenate %28, %57 in 1 : vector<8x256xf32>, vector<8x256xf32> -> vector<8x512xf32>
    %c17_i32 = arith.constant 17 : i32
    %59 = tpu.dynamic_rotate %58 by %c17_i32 dim 1 : vector<8x512xf32>, i32 -> vector<8x512xf32>
    %c0_31 = arith.constant 0 : index
    %c0_32 = arith.constant 0 : index
    %c0_33 = arith.constant 0 : index
    %60 = vector.load %arg8[%c0_31, %c0_32, %c0_33] : memref<9x1x512xf32, #tpu.memory_space<vmem>>, vector<1x1x512xf32>
    %61 = vector.shape_cast %60 : vector<1x1x512xf32> to vector<1x512xf32>
    %62 = vector.broadcast %61 : vector<1x512xf32> to vector<8x512xf32>
    %63 = arith.mulf %59, %62 : vector<8x512xf32>
    %c16_i32 = arith.constant 16 : i32
    %64 = tpu.dynamic_rotate %58 by %c16_i32 dim 1 : vector<8x512xf32>, i32 -> vector<8x512xf32>
    %c1_34 = arith.constant 1 : index
    %c0_35 = arith.constant 0 : index
    %c0_36 = arith.constant 0 : index
    %65 = vector.load %arg8[%c1_34, %c0_35, %c0_36] : memref<9x1x512xf32, #tpu.memory_space<vmem>>, vector<1x1x512xf32>
    %66 = vector.shape_cast %65 : vector<1x1x512xf32> to vector<1x512xf32>
    %67 = vector.broadcast %66 : vector<1x512xf32> to vector<8x512xf32>
    %68 = arith.mulf %64, %67 : vector<8x512xf32>
    %c15_i32 = arith.constant 15 : i32
    %69 = tpu.dynamic_rotate %58 by %c15_i32 dim 1 : vector<8x512xf32>, i32 -> vector<8x512xf32>
    %c2 = arith.constant 2 : index
    %c0_37 = arith.constant 0 : index
    %c0_38 = arith.constant 0 : index
    %70 = vector.load %arg8[%c2, %c0_37, %c0_38] : memref<9x1x512xf32, #tpu.memory_space<vmem>>, vector<1x1x512xf32>
    %71 = vector.shape_cast %70 : vector<1x1x512xf32> to vector<1x512xf32>
    %72 = vector.broadcast %71 : vector<1x512xf32> to vector<8x512xf32>
    %73 = arith.mulf %69, %72 : vector<8x512xf32>
    %c1_i32 = arith.constant 1 : i32
    %74 = tpu.dynamic_rotate %58 by %c1_i32 dim 1 : vector<8x512xf32>, i32 -> vector<8x512xf32>
    %c3 = arith.constant 3 : index
    %c0_39 = arith.constant 0 : index
    %c0_40 = arith.constant 0 : index
    %75 = vector.load %arg8[%c3, %c0_39, %c0_40] : memref<9x1x512xf32, #tpu.memory_space<vmem>>, vector<1x1x512xf32>
    %76 = vector.shape_cast %75 : vector<1x1x512xf32> to vector<1x512xf32>
    %77 = vector.broadcast %76 : vector<1x512xf32> to vector<8x512xf32>
    %78 = arith.mulf %74, %77 : vector<8x512xf32>
    %c511_i32 = arith.constant 511 : i32
    %79 = tpu.dynamic_rotate %58 by %c511_i32 dim 1 : vector<8x512xf32>, i32 -> vector<8x512xf32>
    %c5 = arith.constant 5 : index
    %c0_41 = arith.constant 0 : index
    %c0_42 = arith.constant 0 : index
    %80 = vector.load %arg8[%c5, %c0_41, %c0_42] : memref<9x1x512xf32, #tpu.memory_space<vmem>>, vector<1x1x512xf32>
    %81 = vector.shape_cast %80 : vector<1x1x512xf32> to vector<1x512xf32>
    %82 = vector.broadcast %81 : vector<1x512xf32> to vector<8x512xf32>
    %83 = arith.mulf %79, %82 : vector<8x512xf32>
    %c497_i32 = arith.constant 497 : i32
    %84 = tpu.dynamic_rotate %58 by %c497_i32 dim 1 : vector<8x512xf32>, i32 -> vector<8x512xf32>
    %c6 = arith.constant 6 : index
    %c0_43 = arith.constant 0 : index
    %c0_44 = arith.constant 0 : index
    %85 = vector.load %arg8[%c6, %c0_43, %c0_44] : memref<9x1x512xf32, #tpu.memory_space<vmem>>, vector<1x1x512xf32>
    %86 = vector.shape_cast %85 : vector<1x1x512xf32> to vector<1x512xf32>
    %87 = vector.broadcast %86 : vector<1x512xf32> to vector<8x512xf32>
    %88 = arith.mulf %84, %87 : vector<8x512xf32>
    %c496_i32 = arith.constant 496 : i32
    %89 = tpu.dynamic_rotate %58 by %c496_i32 dim 1 : vector<8x512xf32>, i32 -> vector<8x512xf32>
    %c7 = arith.constant 7 : index
    %c0_45 = arith.constant 0 : index
    %c0_46 = arith.constant 0 : index
    %90 = vector.load %arg8[%c7, %c0_45, %c0_46] : memref<9x1x512xf32, #tpu.memory_space<vmem>>, vector<1x1x512xf32>
    %91 = vector.shape_cast %90 : vector<1x1x512xf32> to vector<1x512xf32>
    %92 = vector.broadcast %91 : vector<1x512xf32> to vector<8x512xf32>
    %93 = arith.mulf %89, %92 : vector<8x512xf32>
    %c495_i32 = arith.constant 495 : i32
    %94 = tpu.dynamic_rotate %58 by %c495_i32 dim 1 : vector<8x512xf32>, i32 -> vector<8x512xf32>
    %c8 = arith.constant 8 : index
    %c0_47 = arith.constant 0 : index
    %c0_48 = arith.constant 0 : index
    %95 = vector.load %arg8[%c8, %c0_47, %c0_48] : memref<9x1x512xf32, #tpu.memory_space<vmem>>, vector<1x1x512xf32>
    %96 = vector.shape_cast %95 : vector<1x1x512xf32> to vector<1x512xf32>
    %97 = vector.broadcast %96 : vector<1x512xf32> to vector<8x512xf32>
    %98 = arith.mulf %94, %97 : vector<8x512xf32>
    %99 = tpu.concatenate %63, %68, %73, %78, %58, %83, %88, %93, %98 in 0 : vector<8x512xf32>, vector<8x512xf32>, vector<8x512xf32>, vector<8x512xf32>, vector<8x512xf32>, vector<8x512xf32>, vector<8x512xf32>, vector<8x512xf32>, vector<8x512xf32> -> vector<72x512xf32>
    %100 = arith.truncf %99 : vector<72x512xf32> to vector<72x512xbf16>
    %c0_49 = arith.constant 0 : index
    %c0_50 = arith.constant 0 : index
    %101 = vector.load %arg6[%c0_49, %c0_50] : memref<16x72xbf16, #tpu.memory_space<vmem>>, vector<16x72xbf16>
    %cst_51 = arith.constant dense<0.000000e+00> : vector<16x512xf32>
    %102 = tpu.matmul %101, %100, %cst_51 {dimension_numbers = #tpu.dot_dimension_numbers<[1], [0], [0], [1], [0, 0, 1, 1], [], []>} : vector<16x72xbf16>, vector<72x512xbf16>, vector<16x512xf32> -> vector<16x512xf32>
    %c0_52 = arith.constant 0 : index
    %c0_53 = arith.constant 0 : index
    %103 = vector.load %arg7[%c0_52, %c0_53] : memref<16x1xf32, #tpu.memory_space<vmem>>, vector<16x1xf32>
    %104 = vector.broadcast %103 : vector<16x1xf32> to vector<16x512xf32>
    %105 = arith.addf %102, %104 : vector<16x512xf32>
    %106 = vector.extract_strided_slice %105 {offsets = [0, 0], sizes = [16, 256], strides = [1, 1]} : vector<16x512xf32> to vector<16x256xf32>
    %c0_54 = arith.constant 0 : index
    %c0_55 = arith.constant 0 : index
    %c0_56 = arith.constant 0 : index
    %107 = vector.load %arg9[%c0_54, %c0_55, %c0_56] : memref<2x16x256xf32, #tpu.memory_space<vmem>>, vector<1x16x256xf32>
    %108 = vector.shape_cast %107 : vector<1x16x256xf32> to vector<16x256xf32>
    %109 = vector.shape_cast %106 : vector<16x256xf32> to vector<1x16x256xf32>
    tpu.vector_store %arg9[%c0_54, %c0_55, %c0_56], %109 {strides = array<i32>} : memref<2x16x256xf32, #tpu.memory_space<vmem>>, vector<1x16x256xf32>,
    %110 = vector.extract_strided_slice %105 {offsets = [0, 256], sizes = [16, 256], strides = [1, 1]} : vector<16x512xf32> to vector<16x256xf32>
    %c1_57 = arith.constant 1 : index
    %c0_58 = arith.constant 0 : index
    %c0_59 = arith.constant 0 : index
    %111 = vector.load %arg9[%c1_57, %c0_58, %c0_59] : memref<2x16x256xf32, #tpu.memory_space<vmem>>, vector<1x16x256xf32>
    %112 = vector.shape_cast %111 : vector<1x16x256xf32> to vector<16x256xf32>
    %113 = vector.shape_cast %110 : vector<16x256xf32> to vector<1x16x256xf32>
    tpu.vector_store %arg9[%c1_57, %c0_58, %c0_59], %113 {strides = array<i32>} : memref<2x16x256xf32, #tpu.memory_space<vmem>>, vector<1x16x256xf32>,
    return
  }
  func.func @transform_0(%arg0: i32) -> (i32, i32, i32) {
    %c0_i32 = arith.constant 0 : i32
    %c0_i32_0 = arith.constant 0 : i32
    %c0_i32_1 = arith.constant 0 : i32
    return %arg0, %c0_i32, %c0_i32_0 : i32, i32, i32
  }
  func.func @transform_1(%arg0: i32) -> (i32, i32) {
    %c0_i32 = arith.constant 0 : i32
    %c0_i32_0 = arith.constant 0 : i32
    %c0_i32_1 = arith.constant 0 : i32
    return %c0_i32, %c0_i32_0 : i32, i32
  }
  func.func @transform_2(%arg0: i32) -> (i32, i32) {
    %c0_i32 = arith.constant 0 : i32
    %c0_i32_0 = arith.constant 0 : i32
    %c0_i32_1 = arith.constant 0 : i32
    return %c0_i32, %c0_i32_0 : i32, i32
  }
  func.func @transform_3(%arg0: i32) -> (i32, i32) {
    %c0_i32 = arith.constant 0 : i32
    %c0_i32_0 = arith.constant 0 : i32
    %c0_i32_1 = arith.constant 0 : i32
    return %c0_i32, %c0_i32_0 : i32, i32
  }
  func.func @transform_4(%arg0: i32) -> (i32, i32) {
    %c0_i32 = arith.constant 0 : i32
    %c0_i32_0 = arith.constant 0 : i32
    %c0_i32_1 = arith.constant 0 : i32
    return %c0_i32, %c0_i32_0 : i32, i32
  }
  func.func @transform_5(%arg0: i32) -> (i32, i32) {
    %c0_i32 = arith.constant 0 : i32
    %c0_i32_0 = arith.constant 0 : i32
    %c0_i32_1 = arith.constant 0 : i32
    return %c0_i32, %c0_i32_0 : i32, i32
  }
  func.func @transform_6(%arg0: i32) -> (i32, i32) {
    %c0_i32 = arith.constant 0 : i32
    %c0_i32_0 = arith.constant 0 : i32
    %c0_i32_1 = arith.constant 0 : i32
    return %c0_i32, %c0_i32_0 : i32, i32
  }
  func.func @transform_7(%arg0: i32) -> (i32, i32, i32) {
    %c0_i32 = arith.constant 0 : i32
    %c0_i32_0 = arith.constant 0 : i32
    %c0_i32_1 = arith.constant 0 : i32
    %c0_i32_2 = arith.constant 0 : i32
    return %c0_i32, %c0_i32_0, %c0_i32_1 : i32, i32, i32
  }
  func.func @transform_8(%arg0: i32) -> (i32, i32, i32) {
    %c0_i32 = arith.constant 0 : i32
    %c0_i32_0 = arith.constant 0 : i32
    %c0_i32_1 = arith.constant 0 : i32
    return %arg0, %c0_i32, %c0_i32_0 : i32, i32, i32
  }
}

</mosaic_0001>

<bundles_post_ra>
// kernel: feature_adaptation.1
= control target key start
LH: loop header
LB: loop body
LE: loop exit
PB: predicated region body
PF: predicated region fallthrough
CT: control target
= control target key end

     0   :  { %vm39_vm0 = vcmask 64512   ;;  %v51_v18 = vlaneseq  ;;  %v629_v42 = vmov 0   ;;  %s631_s17 = smov 16   ;;  %s632_s18 = smov 15   ;;  %vm477_vm9 = vcmask 1043456   ;;  %s972_s0 = inlined_call_operand.vmem [shape: f32[2,8,256], index: 0, kind: input, shape index: {}]   ;;  %s973_s1 = inlined_call_operand.vmem [shape: f32[8,8], index: 1, kind: input, shape index: {}]   ;;  %s974_s2 = inlined_call_operand.vmem [shape: f32[1,8], index: 2, kind: input, shape index: {}]   ;;  %s975_s3 = inlined_call_operand.vmem [shape: f32[8,8], index: 3, kind: input, shape index: {}]   ;;  %s976_s4 = inlined_call_operand.vmem [shape: f32[8,1], index: 4, kind: input, shape index: {}]   ;;  %s977_s6 = inlined_call_operand.vmem [shape: f32[16,1], index: 6, kind: input, shape index: {}]   ;;  %s978_s5 = inlined_call_operand.vmem [shape: bf16[16,72], index: 5, kind: input, shape index: {}]   ;;  %s979_s7 = inlined_call_operand.vmem [shape: f32[9,1,512], index: 7, kind: input, shape index: {}]   ;;  %s980_s8 = inlined_call_operand.vmem [shape: f32[2,16,256], index: 8, kind: output, shape index: {}]  }
   0x1   :  { %v686_v0 = vld [vmem:[%s972_s0] sm:$0xff]  ;;  %v691_v1 = vld [vmem:[%s972_s0 + $0x8] sm:$0xff]  ;;  %v696_v2 = vld [vmem:[%s972_s0 + $0x10] sm:$0xff]  ;;  %618 = vset.pattern.permute.xlu0 %v629_v42  ;;  %619 = vset.pattern.permute.xlu1 %v629_v42  ;;  %s633_s19 = smov 1   ;;  %s634_s20 = smov 127   ;;  %vm473_vm10 = vcmask 588800  }
   0x2   :  { %v32_v3 = vadd.f32 %v691_v1, %v686_v0  ;;  %v703_v4 = vld [vmem:[%s972_s0 + $0x18] sm:$0xff]  ;;  %v37_v6 = vld [vmem:[%s973_s1] sm:$0xff]  ;;  %v713_v23 = vshrl.u32 %v51_v18, 7  ;;  %522 = vmatprep.mubr.bf16.mxu0 %v629_v42  ;;  %565 = vmatprep.mubr.bf16.mxu1 %v629_v42  ;;  %s635_s21 = smov 113   ;;  %s636_s22 = smov 112   ;;  %v457_v62 = vld [vmem:[%s977_s6 + $0x8] sm:$0xff] }
   0x3   :  { %v77_v5 = vadd.f32 %v703_v4, %v696_v2  ;;  %v47_v25 = vld [vmem:[%s974_s2] sm:$0x1]  ;;  %s637_s23 = smov 111  }
   0x4   :  { %33 = vadd.xlane.f32.xlu0 %v32_v3  ;;  %v719_v29 = vsub.s32 0, %v713_v23  ;;  %v50_v33 = vld [vmem:[%s975_s3] sm:$0xff] }
   0x5   :  { %v59_v43 = vld [vmem:[%s976_s4] sm:$0xff]  ;;  %s630_s4 = smov 17  }
   0x6   :  { %v456_v63 = vld [vmem:[%s977_s6] sm:$0xff] }
   0x8   :  { %78 = vadd.xlane.f32.xlu0 %v77_v5  ;;  %v784_v5 = vand.u32 127, %v51_v18 }
   0xa   :  { %vm162_vm1 = vcmp.lt.s32.totalorder %v784_v5, 16  ;;  %vm123_vm2 = vcmp.lt.s32.totalorder %v784_v5, 17  ;;  %vm202_vm3 = vcmp.lt.s32.totalorder %v784_v5, 15  ;;  %vm242_vm4 = vcmp.lt.s32.totalorder %v784_v5, 1 }
   0xb   :  { %vm282_vm5 = vcmp.lt.s32.totalorder %v784_v5, 127  ;;  %vm322_vm6 = vcmp.lt.s32.totalorder %v784_v5, 113  ;;  %vm362_vm7 = vcmp.lt.s32.totalorder %v784_v5, 112  ;;  %vm402_vm8 = vcmp.lt.s32.totalorder %v784_v5, 111 }
  0x91   :  { %v34_v7 = vpop.xlane.xlu0 %33 }
  0x92   :  { %v36_v8 = vmul.f32 0.00390625, %v34_v7 }
  0x94   :  { %v38_v9 = vmul.f32 %v37_v6, %v36_v8  ;;  %v593_v8 = vld [vmem:[%s979_s7 + $0x4] sm:$0xf] }
  0x95   :  { %v79_v10 = vpop.xlane.xlu0 %78 }
  0x96   :  { %v80_v11 = vmul.f32 0.00390625, %v79_v10  ;;  %v40_v12 = vsel %vm39_vm0, %v38_v9, 0.0  ;;  %v792_v9 = vsub.s32 1, %v713_v23  ;;  %v128_v10 = vld [vmem:[%s979_s7] sm:$0xf] }
  0x97   :  { %v41_v13 = vrot.slane %v40_v12, 4 }
  0x98   :  { %v81_v14 = vmul.f32 %v80_v11, %v37_v6  ;;  %v177_v18 = vrot.slane %v593_v8, %v792_v9 }
  0x99   :  { %v42_v15 = vadd.f32 %v41_v13, %v40_v12  ;;  %v802_v13 = vsub.s32 2, %v713_v23 }
  0x9a   :  { %v82_v16 = vsel %vm39_vm0, %v81_v14, 0.0  ;;  %v173_v14 = vrot.slane %v593_v8, %v719_v29 }
  0x9b   :  { %v43_v17 = vrot.slane %v42_v15, 2  ;;  %v83_v19 = vrot.slane %v82_v16, 4 }
  0x9d   :  { %v44_v20 = vadd.f32 %v43_v17, %v42_v15  ;;  %v84_v21 = vadd.f32 %v83_v19, %v82_v16  ;;  %v806_v15 = vsub.s32 3, %v713_v23  ;;  %v137_v17 = vrot.slane %v128_v10, %v792_v9 }
  0x9e   :  { %v141_v23 = vrot.slane %v128_v10, %v802_v13 }
  0x9f   :  { %v45_v22 = vrot.slane %v44_v20, 1  ;;  %v85_v24 = vrot.slane %v84_v21, 2 }
  0xa1   :  { %v46_v26 = vadd.f32 %v45_v22, %v44_v20  ;;  %v86_v27 = vadd.f32 %v85_v24, %v84_v21  ;;  %v133_v20 = vrot.slane %v128_v10, %v719_v29 }
  0xa3   :  { %v48_v28 = vadd.f32 %v47_v25, %v46_v26  ;;  %v87_v30 = vrot.slane %v86_v27, 1 }
  0xa5   :  { %v49_v31 = vmax.f32 %v48_v28, 0.0  ;;  %v88_v32 = vadd.f32 %v87_v30, %v86_v27  ;;  %v145_v27 = vrot.slane %v128_v10, %v806_v15  ;;  %v181_v28 = vrot.slane %v593_v8, %v802_v13 }
  0xa7   :  { %v54_v34 = vrot.slane %v49_v31, %v719_v29  ;;  %v89_v35 = vadd.f32 %v88_v32, %v47_v25  ;;  %v185_v32 = vrot.slane %v593_v8, %v806_v15 }
  0xa9   :  { %v55_v36 = vmul.f32 %v54_v34, %v50_v33  ;;  %v90_v37 = vmax.f32 %v89_v35, 0.0 }
  0xab   :  { %v56_v38 = vsel %vm39_vm0, %v55_v36, 0.0  ;;  %v94_v39 = vrot.slane %v90_v37, %v719_v29 }
  0xac   :  { %57 = vadd.xlane.f32.xlu1 %v56_v38 }
  0xad   :  { %v95_v40 = vmul.f32 %v94_v39, %v50_v33 }
  0xaf   :  { %v96_v41 = vsel %vm39_vm0, %v95_v40, 0.0 }
  0xb0   :  { %97 = vadd.xlane.f32.xlu1 %v96_v41 }
 0x139   :  { %v58_v44 = vpop.xlane.xlu1 %57 }
 0x13a   :  { %v60_v45 = vadd.f32 %v59_v43, %v58_v44 }
 0x13c   :  { %v589_v46 = vmul.f32 -1.442695, %v60_v45 }
 0x13d   :  { %v98_v47 = vpop.xlane.xlu1 %97 }
 0x13e   :  { %621 = vpow2.f32 %v589_v46  ;;  %v99_v48 = vadd.f32 %v98_v47, %v59_v43 }
 0x140   :  { %v592_v49 = vmul.f32 -1.442695, %v99_v48 }
 0x142   :  { %623 = vpow2.f32 %v592_v49  ;;  %v594_v49 = vld [vmem:[%s979_s7 + $0x8] sm:$0xf] }
 0x148   :  { %v622_v50 = vpop.eup %621 }
 0x149   :  { %v64_v51 = vadd.f32 1.0, %v622_v50  ;;  %v595_v50 = vld [vmem:[%s979_s7 + $0xc] sm:$0xf] }
 0x14a   :  { %v265_v8 = vrot.slane %v595_v50, %v806_v15 }
 0x14b   :  { %625 = vrcp.f32 %v64_v51 }
 0x14c   :  { %v624_v52 = vpop.eup %623 }
 0x14d   :  { %v103_v53 = vadd.f32 1.0, %v624_v52 }
 0x14f   :  { %627 = vrcp.f32 %v103_v53  ;;  %v213_v53 = vrot.slane %v594_v49, %v719_v29 }
 0x155   :  { %v626_v54 = vpop.eup %625 }
 0x156   :  { %69 = vperm.xlu0 %618, %v626_v54   ;;  %v217_v54 = vrot.slane %v594_v49, %v792_v9 }
 0x159   :  { %v628_v55 = vpop.eup %627 }
 0x15a   :  { %108 = vperm.xlu1 %619, %v628_v55   ;;  %v253_v55 = vrot.slane %v595_v50, %v719_v29 }
 0x1d5   :  { %v70_v56 = vpop.permute.xlu0 %69 }
 0x1d6   :  { %v732_v57 = vmul.f32 %v70_v56, %v686_v0  ;;  %v736_v59 = vmul.f32 %v70_v56, %v691_v1  ;;  %v257_v56 = vrot.slane %v595_v50, %v792_v9 }
 0x1d8   :  { %113 = vrot.lane.b32.xlu1 %v732_v57, %s630_s4 }
 0x1d9   :  { %v109_v58 = vpop.permute.xlu1 %108 }
 0x1da   :  { %v739_v60 = vmul.f32 %v703_v4, %v109_v58  ;;  %v744_v61 = vmul.f32 %v696_v2, %v109_v58 }
 0x1dc   :  { %160 = vrot.lane.b32.xlu0 %v739_v60, %s631_s17  ;;  %115 = vrot.lane.b32.xlu1 %v736_v59, %s630_s4 }
 0x1e0   :  { %196 = vrot.lane.b32.xlu0 %v736_v59, %s632_s18  ;;  %117 = vrot.lane.b32.xlu1 %v744_v61, %s630_s4 }
 0x1e4   :  { %200 = vrot.lane.b32.xlu0 %v739_v60, %s632_s18  ;;  %119 = vrot.lane.b32.xlu1 %v739_v60, %s630_s4 }
 0x1e8   :  { %236 = vrot.lane.b32.xlu0 %v736_v59, %s633_s19  ;;  %154 = vrot.lane.b32.xlu1 %v732_v57, %s631_s17 }
 0x1ec   :  { %240 = vrot.lane.b32.xlu0 %v739_v60, %s633_s19  ;;  %156 = vrot.lane.b32.xlu1 %v736_v59, %s631_s17 }
 0x1f0   :  { %276 = vrot.lane.b32.xlu0 %v736_v59, %s634_s20  ;;  %158 = vrot.lane.b32.xlu1 %v744_v61, %s631_s17 }
 0x1f4   :  { %280 = vrot.lane.b32.xlu0 %v739_v60, %s634_s20  ;;  %194 = vrot.lane.b32.xlu1 %v732_v57, %s632_s18 }
 0x1f8   :  { %316 = vrot.lane.b32.xlu0 %v736_v59, %s635_s21  ;;  %198 = vrot.lane.b32.xlu1 %v744_v61, %s632_s18 }
 0x1fc   :  { %320 = vrot.lane.b32.xlu0 %v739_v60, %s635_s21  ;;  %234 = vrot.lane.b32.xlu1 %v732_v57, %s633_s19 }
 0x200   :  { %356 = vrot.lane.b32.xlu0 %v736_v59, %s636_s22  ;;  %238 = vrot.lane.b32.xlu1 %v744_v61, %s633_s19 }
 0x204   :  { %360 = vrot.lane.b32.xlu0 %v739_v60, %s636_s22  ;;  %274 = vrot.lane.b32.xlu1 %v732_v57, %s634_s20 }
 0x208   :  { %396 = vrot.lane.b32.xlu0 %v736_v59, %s637_s23  ;;  %278 = vrot.lane.b32.xlu1 %v744_v61, %s634_s20 }
 0x20c   :  { %400 = vrot.lane.b32.xlu0 %v739_v60, %s637_s23  ;;  %314 = vrot.lane.b32.xlu1 %v732_v57, %s635_s21 }
 0x210   :  { %465 = vperm.xlu0 %618, %v457_v62   ;;  %318 = vrot.lane.b32.xlu1 %v744_v61, %s635_s21 }
 0x214   :  { %354 = vrot.lane.b32.xlu1 %v732_v57, %s636_s22 }
 0x218   :  { %358 = vrot.lane.b32.xlu1 %v744_v61, %s636_s22 }
 0x21c   :  { %394 = vrot.lane.b32.xlu1 %v732_v57, %s637_s23 }
 0x220   :  { %398 = vrot.lane.b32.xlu1 %v744_v61, %s637_s23 }
 0x224   :  { %460 = vperm.xlu1 %619, %v456_v63   ;;  %v221_v63 = vrot.slane %v594_v49, %v802_v13 }
 0x24a   :  { %v114_v0 = vpop.permute.xlu1 %113 }
 0x24e   :  { %v116_v1 = vpop.permute.xlu1 %115  ;;  %v161_v2 = vpop.permute.xlu0 %160 }
 0x24f   :  { %v126_v19 = vsel %vm123_vm2, %v114_v0, %v116_v1 }
 0x250   :  { %v151_v30 = vmul.f32 %v137_v17, %v126_v19 }
 0x252   :  { %v118_v3 = vpop.permute.xlu1 %117  ;;  %v781_v4 = vpop.permute.xlu0 %196 }
 0x253   :  { %v125_v33 = vsel %vm123_vm2, %v116_v1, %v118_v3 }
 0x254   :  { %v152_v41 = vmul.f32 %v141_v23, %v125_v33 }
 0x256   :  { %v120_v6 = vpop.permute.xlu1 %119  ;;  %v786_v7 = vpop.permute.xlu0 %200 }
 0x257   :  { %v127_v21 = vsel %vm123_vm2, %v120_v6, %v114_v0  ;;  %v124_v34 = vsel %vm123_vm2, %v118_v3, %v120_v6  ;;  %v225_v0 = vrot.slane %v594_v49, %v806_v15  ;;  %v261_v6 = vrot.slane %v595_v50, %v802_v13 }
 0x258   :  { %v150_v35 = vmul.f32 %v133_v20, %v127_v21  ;;  %v153_v44 = vmul.f32 %v145_v27, %v124_v34 }
 0x25a   :  { %v155_v11 = vpop.permute.xlu1 %154  ;;  %v799_v12 = vpop.permute.xlu0 %236 }
 0x25b   :  { %v166_v16 = vsel %vm162_vm1, %v161_v2, %v155_v11 }
 0x25c   :  { %v190_v25 = vmul.f32 %v173_v14, %v166_v16 }
 0x25e   :  { %v157_v22 = vpop.permute.xlu1 %156  ;;  %v241_v24 = vpop.permute.xlu0 %240  ;;  %v434_v40 = vpack.c.bf16 %v190_v25, %v150_v35 }
 0x25f   :  { %v165_v26 = vsel %vm162_vm1, %v155_v11, %v157_v22 }
 0x260   :  { %v191_v31 = vmul.f32 %v177_v18, %v165_v26  ;;  %v596_v18 = vld [vmem:[%s979_s7 + $0x14] sm:$0xf] }
 0x261   :  { %v305_v27 = vrot.slane %v596_v18, %v806_v15 }
 0x262   :  { %v159_v36 = vpop.permute.xlu1 %158  ;;  %v435_v37 = vpack.c.bf16 %v191_v31, %v151_v30  ;;  %v831_v43 = vpop.permute.xlu0 %276 }
 0x263   :  { %v163_v38 = vsel %vm162_vm1, %v159_v36, %v161_v2  ;;  %v164_v39 = vsel %vm162_vm1, %v157_v22, %v159_v36 }
 0x264   :  { %v192_v42 = vmul.f32 %v181_v28, %v164_v39  ;;  %490 = vmatprep.subr.bf16.mxu0 %v435_v37  ;;  %v193_v45 = vmul.f32 %v185_v32, %v163_v38  ;;  %v297_v37 = vrot.slane %v596_v18, %v792_v9  ;;  %v301_v38 = vrot.slane %v596_v18, %v802_v13 }
 0x265   :  { %491 = vmatpush1.bf16.msra.mxu0 %v434_v40 }
 0x266   :  { %v195_v46 = vpop.permute.xlu1 %194  ;;  %v437_v47 = vpack.c.bf16 %v193_v45, %v153_v44  ;;  %v436_v48 = vpack.c.bf16 %v192_v42, %v152_v41  ;;  %v281_v51 = vpop.permute.xlu0 %280 }
 0x267   :  { %v205_v58 = vsel %vm202_vm3, %v195_v46, %v781_v4  ;;  %v206_v62 = vsel %vm202_vm3, %v786_v7, %v195_v46 }
 0x268   :  { %533 = vmatprep.subr.bf16.mxu1 %v437_v47  ;;  %v230_v10 = vmul.f32 %v213_v53, %v206_v62  ;;  %v231_v11 = vmul.f32 %v217_v54, %v205_v58 }
 0x269   :  { %534 = vmatpush1.bf16.msra.mxu1 %v436_v48 }
 0x26a   :  { %v199_v52 = vpop.permute.xlu1 %198  ;;  %v860_v14 = vpop.permute.xlu0 %316 }
 0x26b   :  { %v203_v19 = vsel %vm202_vm3, %v199_v52, %v786_v7  ;;  %v204_v20 = vsel %vm202_vm3, %v781_v4, %v199_v52 }
 0x26c   :  { %v232_v28 = vmul.f32 %v221_v63, %v204_v20  ;;  %v233_v7 = vmul.f32 %v225_v0, %v203_v19  ;;  %v599_v0 = vld [vmem:[%s979_s7 + $0x20] sm:$0xf] }
 0x26d   :  { %v413_v20 = vrot.slane %v599_v0, %v719_v29 }
 0x26e   :  { %v235_v1 = vpop.permute.xlu1 %234  ;;  %v321_v4 = vpop.permute.xlu0 %320 }
 0x26f   :  { %v245_v2 = vsel %vm242_vm4, %v235_v1, %v799_v12  ;;  %v246_v3 = vsel %vm242_vm4, %v241_v24, %v235_v1 }
 0x270   :  { %v270_v16 = vmul.f32 %v253_v55, %v246_v3  ;;  %v271_v17 = vmul.f32 %v257_v56, %v245_v2 }
 0x272   :  { %v239_v21 = vpop.permute.xlu1 %238  ;;  %v439_v22 = vpack.c.bf16 %v271_v17, %v231_v11  ;;  %v438_v23 = vpack.c.bf16 %v270_v16, %v230_v10  ;;  %v357_v45 = vpop.permute.xlu0 %356 }
 0x273   :  { %v243_v25 = vsel %vm242_vm4, %v239_v21, %v241_v24  ;;  %v244_v26 = vsel %vm242_vm4, %v799_v12, %v239_v21  ;;  %v293_v24 = vrot.slane %v596_v18, %v719_v29 }
 0x274   :  { %v272_v30 = vmul.f32 %v261_v6, %v244_v26  ;;  %v273_v31 = vmul.f32 %v265_v8, %v243_v25  ;;  %492 = vmatprep.subr.bf16.mxu0 %v439_v22  ;;  %v425_v25 = vrot.slane %v599_v0, %v806_v15 }
 0x275   :  { %493 = vmatpush1.bf16.msra.mxu0 %v438_v23 }
 0x276   :  { %v275_v32 = vpop.permute.xlu1 %274  ;;  %v441_v33 = vpack.c.bf16 %v273_v31, %v233_v7  ;;  %v440_v34 = vpack.c.bf16 %v272_v30, %v232_v28 }
 0x277   :  { %v286_v35 = vsel %vm282_vm5, %v281_v51, %v275_v32  ;;  %v285_v12 = vsel %vm282_vm5, %v275_v32, %v831_v43 }
 0x278   :  { %v313_v36 = vmul.f32 %v305_v27, %v286_v35  ;;  %535 = vmatprep.subr.bf16.mxu1 %v441_v33  ;;  %v310_v41 = vmul.f32 %v293_v24, %v285_v12  ;;  %v417_v24 = vrot.slane %v599_v0, %v792_v9  ;;  %v421_v12 = vrot.slane %v599_v0, %v802_v13 }
 0x279   :  { %536 = vmatpush1.bf16.msra.mxu1 %v440_v34 }
 0x27a   :  { %v279_v39 = vpop.permute.xlu1 %278  ;;  %v445_v40 = vpack.c.bf16 %v313_v36, %v739_v60  ;;  %v442_v52 = vpack.c.bf16 %v310_v41, %v732_v57  ;;  %v597_v60 = vld [vmem:[%s979_s7 + $0x18] sm:$0xf] }
 0x27b   :  { %v283_v42 = vsel %vm282_vm5, %v279_v39, %v281_v51  ;;  %v284_v44 = vsel %vm282_vm5, %v831_v43, %v279_v39  ;;  %v598_v43 = vld [vmem:[%s979_s7 + $0x1c] sm:$0xf]  ;;  %v361_v51 = vpop.permute.xlu0 %360  ;;  %v337_v54 = vrot.slane %v597_v60, %v792_v9  ;;  %v341_v56 = vrot.slane %v597_v60, %v802_v13 }
 0x27c   :  { %v311_v46 = vmul.f32 %v297_v37, %v284_v44  ;;  %v312_v47 = vmul.f32 %v301_v38, %v283_v42  ;;  %537 = vmatprep.subr.bf16.mxu1 %v445_v40  ;;  %v385_v57 = vrot.slane %v598_v43, %v806_v15  ;;  %v373_v58 = vrot.slane %v598_v43, %v719_v29 }
 0x27d   :  { %v377_v63 = vrot.slane %v598_v43, %v792_v9  ;;  %v381_v8 = vrot.slane %v598_v43, %v802_v13  ;;  %v333_v10 = vrot.slane %v597_v60, %v719_v29  ;;  %v620_v13 = vld [vmem:[%s978_s5] sm:$0xff]  }
 0x27e   :  { %v315_v48 = vpop.permute.xlu1 %314  ;;  %v443_v49 = vpack.c.bf16 %v311_v46, %v736_v59  ;;  %v444_v50 = vpack.c.bf16 %v312_v47, %v744_v61  ;;  %v345_v59 = vrot.slane %v597_v60, %v806_v15 }
 0x27f   :  { %v326_v61 = vsel %vm322_vm6, %v321_v4, %v315_v48  ;;  %v397_v1 = vpop.permute.xlu0 %396  ;;  %v325_v17 = vsel %vm322_vm6, %v315_v48, %v860_v14 }
 0x280   :  { %494 = vmatprep.subr.bf16.mxu0 %v443_v49  ;;  %538 = vmatpush1.bf16.msra.mxu1 %v444_v50  ;;  %v353_v2 = vmul.f32 %v345_v59, %v326_v61 }
 0x281   :  { %495 = vmatpush1.bf16.msra.mxu0 %v442_v52 }
 0x282   :  { %v319_v53 = vpop.permute.xlu1 %318 }
 0x283   :  { %v323_v11 = vsel %vm322_vm6, %v319_v53, %v321_v4  ;;  %v324_v16 = vsel %vm322_vm6, %v860_v14, %v319_v53  ;;  %v350_v14 = vmul.f32 %v333_v10, %v325_v17  ;;  %v401_v30 = vpop.permute.xlu0 %400 }
 0x284   :  { %v351_v26 = vmul.f32 %v337_v54, %v324_v16  ;;  %v352_v27 = vmul.f32 %v341_v56, %v323_v11 }
 0x286   :  { %v355_v55 = vpop.permute.xlu1 %354 }
 0x287   :  { %v366_v62 = vsel %vm362_vm7, %v361_v51, %v355_v55  ;;  %v365_v3 = vsel %vm362_vm7, %v355_v55, %v357_v45 }
 0x288   :  { %v393_v6 = vmul.f32 %v385_v57, %v366_v62  ;;  %v390_v21 = vmul.f32 %v373_v58, %v365_v3 }
 0x28a   :  { %v359_v18 = vpop.permute.xlu1 %358  ;;  %v449_v19 = vpack.c.bf16 %v393_v6, %v353_v2  ;;  %v446_v34 = vpack.c.bf16 %v390_v21, %v350_v14 }
 0x28b   :  { %v363_v22 = vsel %vm362_vm7, %v359_v18, %v361_v51  ;;  %v364_v23 = vsel %vm362_vm7, %v357_v45, %v359_v18 }
 0x28c   :  { %v391_v28 = vmul.f32 %v377_v63, %v364_v23  ;;  %v392_v7 = vmul.f32 %v381_v8, %v363_v22  ;;  %539 = vmatprep.subr.bf16.mxu1 %v449_v19 }
 0x28e   :  { %v395_v31 = vpop.permute.xlu1 %394  ;;  %v447_v4 = vpack.c.bf16 %v391_v28, %v351_v26  ;;  %v448_v32 = vpack.c.bf16 %v392_v7, %v352_v27 }
 0x28f   :  { %v405_v29 = vsel %vm402_vm8, %v395_v31, %v397_v1  ;;  %v406_v33 = vsel %vm402_vm8, %v401_v30, %v395_v31  ;;  %v466_v5 = vpop.permute.xlu0 %465 }
 0x290   :  { %v430_v15 = vmul.f32 %v413_v20, %v405_v29  ;;  %v433_v35 = vmul.f32 %v425_v25, %v406_v33  ;;  %496 = vmatprep.subr.bf16.mxu0 %v447_v4  ;;  %540 = vmatpush1.bf16.msra.mxu1 %v448_v32 }
 0x291   :  { %497 = vmatpush1.bf16.msra.mxu0 %v446_v34 }
 0x292   :  { %v453_v36 = vpack.c.bf16 %v433_v35, %v433_v35  ;;  %v399_v37 = vpop.permute.xlu1 %398  ;;  %v450_v40 = vpack.c.bf16 %v430_v15, %v430_v15 }
 0x293   :  { %v403_v38 = vsel %vm402_vm8, %v399_v37, %v401_v30  ;;  %v404_v39 = vsel %vm402_vm8, %v397_v1, %v399_v37 }
 0x294   :  { %v431_v41 = vmul.f32 %v417_v24, %v404_v39  ;;  %v432_v42 = vmul.f32 %v421_v12, %v403_v38  ;;  %603 = vmatprep.subr.msk.bf16.mxu1 %vm477_vm9, %v453_v36  ;;  %v479_v45 = vsel %vm477_vm9, %v450_v40, 0 }
 0x296   :  { %v451_v9 = vpack.c.bf16 %v431_v41, %v431_v41  ;;  %v452_v44 = vpack.c.bf16 %v432_v42, %v432_v42 }
 0x298   :  { %601 = vmatprep.subr.msk.bf16.mxu0 %vm477_vm9, %v451_v9  ;;  %v485_v46 = vsel %vm477_vm9, %v452_v44, 0 }
 0x299   :  { %499 = vmatpush1.bf16.msra.mxu0 %v479_v45  ;;  %542 = vmatpush1.bf16.msra.mxu1 %v485_v46 }
 0x29c   :  { %602 = vmatmul.mubr.msk.bf16.vlgmr.msra.gmra.mrb[0].mxu0 %vm473_vm10, %v620_v13  ;;  %604 = vmatmul.mubr.msk.bf16.vlgmr.msra.gmra.mrb[0].mxu1 %vm473_vm10, %v620_v13 }
 0x2a3   :  { %v461_v47 = vpop.permute.xlu1 %460 }
 0x36f   :  { %v524_v48 = vpop.f32.mrb[0].mxu0  ;;  %v567_v49 = vpop.f32.mrb[0].mxu1 }
 0x370   :  { %v525_v50 = vadd.f32 %v524_v48, %v461_v47  ;;  %v568_v52 = vadd.f32 %v567_v49, %v461_v47  ;;  %v526_v60 = vpop.f32.mrb[1].mxu0  ;;  %v569_v43 = vpop.f32.mrb[1].mxu1 }
 0x371   :  { %v527_v51 = vadd.f32 %v526_v60, %v461_v47  ;;  %v570_v53 = vadd.f32 %v569_v43, %v461_v47  ;;  %v528_v59 = vpop.f32.mrb[2].mxu0  ;;  %v571_v57 = vpop.f32.mrb[2].mxu1 }
 0x372   :  { %576 = vst [vmem:[%s980_s8] sm:$0xff] %v525_v50  ;;  %605 = vst [vmem:[%s980_s8 + $0x20] sm:$0xff] %v568_v52  ;;  %v529_v61 = vadd.f32 %v528_v59, %v466_v5  ;;  %v572_v54 = vadd.f32 %v571_v57, %v466_v5  ;;  %v530_v55 = vpop.f32.mrb[3].mxu0  ;;  %v573_v56 = vpop.f32.mrb[3].mxu1 }
 0x373   :  { %577 = vst [vmem:[%s980_s8 + $0x8] sm:$0xff] %v527_v51  ;;  %606 = vst [vmem:[%s980_s8 + $0x28] sm:$0xff] %v570_v53  ;;  %v531_v58 = vadd.f32 %v530_v55, %v466_v5  ;;  %v574_v62 = vadd.f32 %v573_v56, %v466_v5 }
 0x374   :  { %578 = vst [vmem:[%s980_s8 + $0x10] sm:$0xff] %v529_v61  ;;  %607 = vst [vmem:[%s980_s8 + $0x30] sm:$0xff] %v572_v54 }
 0x375   :  { %579 = vst [vmem:[%s980_s8 + $0x18] sm:$0xff] %v531_v58  ;;  %608 = vst [vmem:[%s980_s8 + $0x38] sm:$0xff] %v574_v62 }

</bundles_post_ra>
